<compile_context>
chip_gen: v7x
topology: tpu7x:2x2x1
jax: 0.10.0
libtpu: 0.0.40
codegen_flags: <defaults>
</compile_context>

<pallas_src>
from functools import partial

import jax
import jax.numpy as jnp
from jax.experimental import pallas as pl
from jax.experimental.pallas import tpu as pltpu

E_LAMBDA = 1e-4  # simam e_lambda


def _fast_recip(x):
    """1/x via EUP approximate reciprocal + one Newton-Raphson step."""
    r = pl.reciprocal(x, approx=True)
    return r * (2.0 - x * r)


def _sigmoid(y):
    """sigmoid(y) = 0.5 * tanh(0.5*y) + 0.5  (one EUP op + 2 cheap VALU ops)."""
    return 0.5 * jnp.tanh(0.5 * y) + 0.5


def _simam(x, inv_hw, inv_n):
    """simam_module.forward on a (rows, H*W) tile; stats are per-row."""
    # sum(x) and sum(x*x) are independent -> both XLU reduces issue together;
    # sum((x-mu)^2) = s2 - s1*mu avoids a dependent third reduce.
    s1 = jnp.sum(x, axis=-1, keepdims=True)
    s2 = jnp.sum(x * x, axis=-1, keepdims=True)
    mu = s1 * inv_hw
    d = (x - mu) ** 2
    d_sum = jnp.maximum(s2 - s1 * mu, 0.0)        # guard tiny cancellation
    denom = 4.0 * (d_sum * inv_n + E_LAMBDA)
    y = d * _fast_recip(denom) + 0.5              # (rows,1) recip -> bcast mul
    return x * _sigmoid(y)


def diff_kernel(x_ref, w_ref, b_ref, m_ref, o_ref, *scratch,
                W, CG, NG, inv_hw, inv_n):
    # x_ref : (R, HW)   sublane-packed batch*channel rows (R = NG*CG)
    # w_ref : (CG, CG)  BN-folded 1x1-conv weight (bf16)
    # b_ref : (CG, 1)   BN-folded bias (f32)
    # m_ref : (4, HW)   boundary masks [left-ok, right-ok, up-ok, down-ok]
    # scratch: optional (R, HW) f32 VMEM buffer assembling the conv output
    #          when NG > 1.
    x = x_ref[...].astype(jnp.float32)
    HW = x.shape[-1]

    masks = m_ref[...]
    m_left = masks[0:1, :]    # w > 0
    m_right = masks[1:2, :]   # w < W-1
    m_up = masks[2:3, :]      # h > 0
    m_down = masks[3:4, :]    # h < H-1

    # ---- simam #1 ----
    x1 = _simam(x, inv_hw, inv_n)

    # ---- edge = x1 - AvgPool2d(3x3, stride=1, pad=1)(x1), separable ----
    # roll semantics: out[p] = v[(p - shift) mod HW]
    left = pltpu.roll(x1, shift=1, axis=1)           # x1[p-1]
    right = pltpu.roll(x1, shift=HW - 1, axis=1)     # x1[p+1]
    hsum = x1 + left * m_left + right * m_right
    up = pltpu.roll(hsum, shift=W, axis=1)           # hsum[p-W]
    down = pltpu.roll(hsum, shift=HW - W, axis=1)    # hsum[p+W]
    pooled = (hsum + up * m_up + down * m_down) * (1.0 / 9.0)
    edge = x1 - pooled

    # ---- weight = sigmoid(bn1(conv_1(edge))), BN folded into w/b ----
    # bf16 operands + f32 accumulate -> single-pass vmatmul.  NG groups of CG
    # rows each use the same (CG, CG) weight, so MXU work is NG*CG^2*HW with
    # no block-diagonal zero blocks.
    w = w_ref[...]
    b = b_ref[...]
    edge_bf = edge.astype(jnp.bfloat16)
    if NG == 1:
        z = jnp.dot(w, edge_bf, preferred_element_type=jnp.float32) + b
    else:
        z_scr = scratch[0]
        for g in range(NG):  # static unroll; NG is small by construction
            e_g = edge_bf[g * CG:(g + 1) * CG, :]
            z_scr[g * CG:(g + 1) * CG, :] = (
                jnp.dot(w, e_g, preferred_element_type=jnp.float32) + b)
        z = z_scr[...]
    weight = _sigmoid(z)

    # ---- out = simam(weight * x1 + x1) ----
    out = _simam(x1 * (weight + 1.0), inv_hw, inv_n)
    o_ref[...] = out.astype(o_ref.dtype)


def _tpu_vmem_bytes():
    """Physical VMEM per core; conservative (v7x-sized) fallback."""
    try:
        v = int(pltpu.get_tpu_info().vmem_capacity_bytes)
        if v >= (16 << 20):
            return v
    except Exception:
        pass
    return 64 << 20


def _num_tensorcores_hint():
    """Best-effort hint of how many TensorCores one Pallas grid shards over."""
    try:
        kind = jax.devices()[0].device_kind.lower()
        if "v7" in kind:
            return 2
    except Exception:
        pass
    return 1


def _pick_gb(B, C, HW, budget_bytes, prefer_multi_block):
    """Batches folded per grid step.

    gb must divide B and gb*C must be a sublane multiple (or gb == B) so the
    (gb*C, HW) block satisfies the (8, 128) BlockSpec rule with unmasked
    stores.  Prefer the largest block fitting the VMEM budget; on 2-TC chips
    (v7x) prefer leaving >= 2 parallel grid steps so both cores get work.
    """
    bytes_per_batch = C * HW * 4
    valid = [d for d in range(1, B + 1)
             if B % d == 0 and ((d * C) % 8 == 0 or d == B)]
    fitting = [d for d in valid if d * bytes_per_batch <= budget_bytes]
    if not fitting:
        fitting = [min(valid)]
    gb = max(fitting)
    if prefer_multi_block:
        multi = [d for d in fitting if B // d >= 2]
        if multi:
            gb = max(multi)
    return gb


def diff_moudel_pallas(x_nchw, conv_w, conv_b, bn_gamma, bn_beta, bn_mean, bn_var,
                       bn_eps=1e-5):
    B, C, H, W = x_nchw.shape
    HW = H * W
    # TODO(synk): for non-lane-aligned feature maps (7x7, 14x14, ...) pad HW up
    # to a multiple of 128 with pad-aware pool masks and true H*W simam
    # divisors instead of asserting.
    assert HW % 128 == 0, "H*W must be a multiple of 128 for this kernel"

    # Fold eval-mode BatchNorm into the 1x1 conv.
    inv_std = 1.0 / jnp.sqrt(bn_var + bn_eps)
    scale = bn_gamma * inv_std                                      # (C,)
    w_eff = conv_w.reshape(C, C) * scale[:, None]                   # (C, C) f32
    b_eff = ((conv_b - bn_mean) * scale + bn_beta).reshape(C, 1)    # (C, 1) f32
    b_eff = b_eff.astype(jnp.float32)

    # Generation-aware block sizing: ~1/16 of physical VMEM per input block
    # (double-buffered in + out + scratch stay well under the scoped limit),
    # clamped to [1, 8] MiB -> ~4 MiB on v7x (64 MiB VMEM), 8 MiB on v5e/v6e.
    phys_vmem = _tpu_vmem_bytes()
    budget = max(1 << 20, min(8 << 20, phys_vmem // 16))
    gb = _pick_gb(B, C, HW, budget,
                  prefer_multi_block=_num_tensorcores_hint() >= 2)
    R = gb * C
    n_blocks = B // gb

    if C % 8 == 0:
        # Production channel counts: per-group conv, weight stays (C, C) so
        # MXU work / weight VMEM scale as gb*C^2 (no zero blocks).
        CG, NG = C, gb
        w_conv = w_eff.astype(jnp.bfloat16)
        b_conv = b_eff
    else:
        # Tiny / non-sublane-aligned channel counts (e.g. the 4-channel test):
        # fold the gb groups into one small block-diagonal weight so the MXU
        # operand keeps >= 8 sublanes.  gb is budget-capped, so R stays tiny
        # here and the zero-block waste is negligible.
        CG, NG = R, 1
        w_conv = jnp.kron(jnp.eye(gb, dtype=w_eff.dtype),
                          w_eff).astype(jnp.bfloat16)
        b_conv = jnp.tile(b_eff, (gb, 1))

    block_bytes = R * HW * 4
    aux_bytes = CG * CG * 2 + CG * 4 + 4 * HW * 4
    vmem_limit = int(min(phys_vmem * 9 // 10,
                         max(32 << 20, 8 * block_bytes + aux_bytes)))

    # Boundary masks for the separable pool, built once on the host side.
    col = jnp.arange(HW, dtype=jnp.int32) % W
    row = jnp.arange(HW, dtype=jnp.int32) // W
    masks = jnp.stack([col > 0, col < W - 1, row > 0, row < H - 1]
                      ).astype(jnp.float32)                         # (4, HW)

    x_flat = x_nchw.reshape(B * C, HW)

    scratch_shapes = ([pltpu.VMEM((R, HW), jnp.float32)] if NG > 1 else [])

    out_flat = pl.pallas_call(
        partial(diff_kernel, W=W, CG=CG, NG=NG,
                inv_hw=1.0 / float(HW), inv_n=1.0 / float(HW - 1)),
        out_shape=jax.ShapeDtypeStruct((B * C, HW), x_nchw.dtype),
        grid=(n_blocks,),
        in_specs=[
            pl.BlockSpec((R, HW), lambda i: (i, 0)),
            pl.BlockSpec((CG, CG), lambda i: (0, 0)),
            pl.BlockSpec((CG, 1), lambda i: (0, 0)),
            pl.BlockSpec((4, HW), lambda i: (0, 0)),
        ],
        out_specs=pl.BlockSpec((R, HW), lambda i: (i, 0)),
        scratch_shapes=scratch_shapes,
        compiler_params=pltpu.CompilerParams(
            dimension_semantics=("parallel",),
            vmem_limit_bytes=vmem_limit),
    )(x_flat, w_conv, b_conv, masks)

    return out_flat.reshape(B, C, H, W)


# ---------- pure-JAX reference (mirrors the PyTorch forward) ----------
def _ref_forward(x, conv_w, conv_b, gamma, beta, mean, var, eps=1e-5):
    b, c, h, w = x.shape

    def simam(t):
        n = h * w - 1
        mu = t.mean(axis=(2, 3), keepdims=True)
        d = (t - mu) ** 2
        y = d / (4.0 * (d.sum(axis=(2, 3), keepdims=True) / n + E_LAMBDA)) + 0.5
        return t * jax.nn.sigmoid(y)

    x1 = simam(x)
    xp = jnp.pad(x1, ((0, 0), (0, 0), (1, 1), (1, 1)))
    pooled = sum(xp[:, :, i:i + h, j:j + w]
                 for i in range(3) for j in range(3)) / 9.0
    edge = x1 - pooled
    conv = (jnp.einsum('oc,bchw->bohw', conv_w.reshape(c, c), edge)
            + conv_b[None, :, None, None])
    bn = ((conv - mean[None, :, None, None])
          / jnp.sqrt(var + eps)[None, :, None, None]
          * gamma[None, :, None, None] + beta[None, :, None, None])
    weight = jax.nn.sigmoid(bn)
    out = weight * x1 + x1
    return simam(out)


if __name__ == "__main__":
    B, C, H, W = 2, 4, 16, 16

    key = jax.random.PRNGKey(0)
    kx, kw, kb, kg, kbe, km, kv = jax.random.split(key, 7)

    x = jax.random.normal(kx, (B, C, H, W), dtype=jnp.float32)
    conv_w = 0.1 * jax.random.normal(kw, (C, C, 1, 1), dtype=jnp.float32)
    conv_b = 0.1 * jax.random.normal(kb, (C,), dtype=jnp.float32)
    bn_gamma = 1.0 + 0.1 * jax.random.normal(kg, (C,), dtype=jnp.float32)
    bn_beta = 0.1 * jax.random.normal(kbe, (C,), dtype=jnp.float32)
    bn_mean = 0.1 * jax.random.normal(km, (C,), dtype=jnp.float32)
    bn_var = jnp.abs(jax.random.normal(kv, (C,), dtype=jnp.float32)) + 0.5

    out = diff_moudel_pallas(x, conv_w, conv_b, bn_gamma, bn_beta, bn_mean, bn_var)
    out = jax.block_until_ready(out)

    ref = _ref_forward(x, conv_w, conv_b, bn_gamma, bn_beta, bn_mean, bn_var)
    assert out.shape == (B, C, H, W)
    # Tolerance is dominated by the bf16 MXU operands of the 1x1 conv (its
    # output only feeds a sigmoid); the tanh-sigmoid, approx-reciprocal and
    # reassociated reductions contribute << 1e-4.
    err = jnp.max(jnp.abs(out - ref))
    assert jnp.allclose(out, ref, rtol=2e-3, atol=2e-3), f"max abs err {err}"

    print("KERNEL_OK")
</pallas_src>

<mosaic_0001>
module attributes {stable_mosaic.version = 11 : i64} {
  func.func @diff_kernel(%arg0: i32, %arg1: memref<8x256xf32, #tpu.memory_space<vmem>>, %arg2: memref<8x8xbf16, #tpu.memory_space<vmem>>, %arg3: memref<8x1xf32, #tpu.memory_space<vmem>>, %arg4: memref<4x256xf32, #tpu.memory_space<vmem>>, %arg5: memref<8x256xf32, #tpu.memory_space<vmem>>) attributes {dimension_semantics = [#tpu.dimension_semantics<parallel>], iteration_bounds = array<i64: 1>, scalar_prefetch = 0 : i64, scratch_operands = 0 : i64, tpu.core_type = #tpu.core_type<tc>, window_params = [{transform_indices = @transform_0, window_bounds = array<i64: 8, 256>}, {pipeline_mode = #tpu.pipeline_mode<synchronous>, transform_indices = @transform_1, window_bounds = array<i64: 8, 8>}, {pipeline_mode = #tpu.pipeline_mode<synchronous>, transform_indices = @transform_2, window_bounds = array<i64: 8, 1>}, {pipeline_mode = #tpu.pipeline_mode<synchronous>, transform_indices = @transform_3, window_bounds = array<i64: 4, 256>}, {transform_indices = @transform_4, window_bounds = array<i64: 8, 256>}]} {
    %c0 = arith.constant 0 : index
    %c0_0 = arith.constant 0 : index
    %0 = vector.load %arg1[%c0, %c0_0] : memref<8x256xf32, #tpu.memory_space<vmem>>, vector<8x256xf32>
    %c0_1 = arith.constant 0 : index
    %c0_2 = arith.constant 0 : index
    %1 = vector.load %arg4[%c0_1, %c0_2] : memref<4x256xf32, #tpu.memory_space<vmem>>, vector<4x256xf32>
    %2 = vector.extract_strided_slice %1 {offsets = [0, 0], sizes = [1, 256], strides = [1, 1]} : vector<4x256xf32> to vector<1x256xf32>
    %3 = vector.extract_strided_slice %1 {offsets = [1, 0], sizes = [1, 256], strides = [1, 1]} : vector<4x256xf32> to vector<1x256xf32>
    %4 = vector.extract_strided_slice %1 {offsets = [2, 0], sizes = [1, 256], strides = [1, 1]} : vector<4x256xf32> to vector<1x256xf32>
    %5 = vector.extract_strided_slice %1 {offsets = [3, 0], sizes = [1, 256], strides = [1, 1]} : vector<4x256xf32> to vector<1x256xf32>
    %cst = arith.constant dense<0.000000e+00> : vector<8xf32>
    %6 = vector.multi_reduction <add>, %0, %cst [1] : vector<8x256xf32> to vector<8xf32>
    %7 = vector.shape_cast %6 : vector<8xf32> to vector<8x1xf32>
    %8 = arith.mulf %0, %0 : vector<8x256xf32>
    %cst_3 = arith.constant dense<0.000000e+00> : vector<8xf32>
    %9 = vector.multi_reduction <add>, %8, %cst_3 [1] : vector<8x256xf32> to vector<8xf32>
    %10 = vector.shape_cast %9 : vector<8xf32> to vector<8x1xf32>
    %cst_4 = arith.constant 3.906250e-03 : f32
    %11 = vector.broadcast %cst_4 : f32 to vector<8x1xf32>
    %12 = arith.mulf %7, %11 : vector<8x1xf32>
    %13 = vector.broadcast %12 : vector<8x1xf32> to vector<8x256xf32>
    %14 = arith.subf %0, %13 : vector<8x256xf32>
    %15 = arith.mulf %14, %14 : vector<8x256xf32>
    %16 = arith.mulf %7, %12 : vector<8x1xf32>
    %17 = arith.subf %10, %16 : vector<8x1xf32>
    %cst_5 = arith.constant 0.000000e+00 : f32
    %18 = vector.broadcast %cst_5 : f32 to vector<8x1xf32>
    %19 = arith.maximumf %17, %18 : vector<8x1xf32>
    %cst_6 = arith.constant 0.00392156886 : f32
    %20 = vector.broadcast %cst_6 : f32 to vector<8x1xf32>
    %21 = arith.mulf %19, %20 : vector<8x1xf32>
    %cst_7 = arith.constant 9.99999974E-5 : f32
    %22 = vector.broadcast %cst_7 : f32 to vector<8x1xf32>
    %23 = arith.addf %21, %22 : vector<8x1xf32>
    %cst_8 = arith.constant 4.000000e+00 : f32
    %24 = vector.broadcast %cst_8 : f32 to vector<8x1xf32>
    %25 = arith.mulf %24, %23 : vector<8x1xf32>
    %26 = tpu.reciprocal %25 {approx = true} : vector<8x1xf32> -> vector<8x1xf32>
    %27 = arith.mulf %25, %26 : vector<8x1xf32>
    %cst_9 = arith.constant 2.000000e+00 : f32
    %28 = vector.broadcast %cst_9 : f32 to vector<8x1xf32>
    %29 = arith.subf %28, %27 : vector<8x1xf32>
    %30 = arith.mulf %26, %29 : vector<8x1xf32>
    %31 = vector.broadcast %30 : vector<8x1xf32> to vector<8x256xf32>
    %32 = arith.mulf %15, %31 : vector<8x256xf32>
    %cst_10 = arith.constant 5.000000e-01 : f32
    %33 = vector.broadcast %cst_10 : f32 to vector<8x256xf32>
    %34 = arith.addf %32, %33 : vector<8x256xf32>
    %cst_11 = arith.constant 5.000000e-01 : f32
    %35 = vector.broadcast %cst_11 : f32 to vector<8x256xf32>
    %36 = arith.mulf %35, %34 : vector<8x256xf32>
    %37 = math.tanh %36 : vector<8x256xf32>
    %cst_12 = arith.constant 5.000000e-01 : f32
    %38 = vector.broadcast %cst_12 : f32 to vector<8x256xf32>
    %39 = arith.mulf %38, %37 : vector<8x256xf32>
    %cst_13 = arith.constant 5.000000e-01 : f32
    %40 = vector.broadcast %cst_13 : f32 to vector<8x256xf32>
    %41 = arith.addf %39, %40 : vector<8x256xf32>
    %42 = arith.mulf %0, %41 : vector<8x256xf32>
    %c1_i32 = arith.constant 1 : i32
    %43 = tpu.dynamic_rotate %42 by %c1_i32 dim 1 : vector<8x256xf32>, i32 -> vector<8x256xf32>
    %c255_i32 = arith.constant 255 : i32
    %44 = tpu.dynamic_rotate %42 by %c255_i32 dim 1 : vector<8x256xf32>, i32 -> vector<8x256xf32>
    %45 = vector.broadcast %2 : vector<1x256xf32> to vector<8x256xf32>
    %46 = arith.mulf %43, %45 : vector<8x256xf32>
    %47 = arith.addf %42, %46 : vector<8x256xf32>
    %48 = vector.broadcast %3 : vector<1x256xf32> to vector<8x256xf32>
    %49 = arith.mulf %44, %48 : vector<8x256xf32>
    %50 = arith.addf %47, %49 : vector<8x256xf32>
    %c16_i32 = arith.constant 16 : i32
    %51 = tpu.dynamic_rotate %50 by %c16_i32 dim 1 : vector<8x256xf32>, i32 -> vector<8x256xf32>
    %c240_i32 = arith.constant 240 : i32
    %52 = tpu.dynamic_rotate %50 by %c240_i32 dim 1 : vector<8x256xf32>, i32 -> vector<8x256xf32>
    %53 = vector.broadcast %4 : vector<1x256xf32> to vector<8x256xf32>
    %54 = arith.mulf %51, %53 : vector<8x256xf32>
    %55 = arith.addf %50, %54 : vector<8x256xf32>
    %56 = vector.broadcast %5 : vector<1x256xf32> to vector<8x256xf32>
    %57 = arith.mulf %52, %56 : vector<8x256xf32>
    %58 = arith.addf %55, %57 : vector<8x256xf32>
    %cst_14 = arith.constant 0.111111112 : f32
    %59 = vector.broadcast %cst_14 : f32 to vector<8x256xf32>
    %60 = arith.mulf %58, %59 : vector<8x256xf32>
    %61 = arith.subf %42, %60 : vector<8x256xf32>
    %c0_15 = arith.constant 0 : index
    %c0_16 = arith.constant 0 : index
    %62 = vector.load %arg2[%c0_15, %c0_16] : memref<8x8xbf16, #tpu.memory_space<vmem>>, vector<8x8xbf16>
    %c0_17 = arith.constant 0 : index
    %c0_18 = arith.constant 0 : index
    %63 = vector.load %arg3[%c0_17, %c0_18] : memref<8x1xf32, #tpu.memory_space<vmem>>, vector<8x1xf32>
    %64 = arith.truncf %61 : vector<8x256xf32> to vector<8x256xbf16>
    %cst_19 = arith.constant dense<0.000000e+00> : vector<8x256xf32>
    %65 = tpu.matmul %62, %64, %cst_19 {dimension_numbers = #tpu.dot_dimension_numbers<[1], [0], [0], [1], [0, 0, 1, 1], [], []>} : vector<8x8xbf16>, vector<8x256xbf16>, vector<8x256xf32> -> vector<8x256xf32>
    %66 = vector.broadcast %63 : vector<8x1xf32> to vector<8x256xf32>
    %67 = arith.addf %65, %66 : vector<8x256xf32>
    %cst_20 = arith.constant 5.000000e-01 : f32
    %68 = vector.broadcast %cst_20 : f32 to vector<8x256xf32>
    %69 = arith.mulf %68, %67 : vector<8x256xf32>
    %70 = math.tanh %69 : vector<8x256xf32>
    %cst_21 = arith.constant 5.000000e-01 : f32
    %71 = vector.broadcast %cst_21 : f32 to vector<8x256xf32>
    %72 = arith.mulf %71, %70 : vector<8x256xf32>
    %cst_22 = arith.constant 5.000000e-01 : f32
    %73 = vector.broadcast %cst_22 : f32 to vector<8x256xf32>
    %74 = arith.addf %72, %73 : vector<8x256xf32>
    %cst_23 = arith.constant 1.000000e+00 : f32
    %75 = vector.broadcast %cst_23 : f32 to vector<8x256xf32>
    %76 = arith.addf %74, %75 : vector<8x256xf32>
    %77 = arith.mulf %42, %76 : vector<8x256xf32>
    %cst_24 = arith.constant dense<0.000000e+00> : vector<8xf32>
    %78 = vector.multi_reduction <add>, %77, %cst_24 [1] : vector<8x256xf32> to vector<8xf32>
    %79 = vector.shape_cast %78 : vector<8xf32> to vector<8x1xf32>
    %80 = arith.mulf %77, %77 : vector<8x256xf32>
    %cst_25 = arith.constant dense<0.000000e+00> : vector<8xf32>
    %81 = vector.multi_reduction <add>, %80, %cst_25 [1] : vector<8x256xf32> to vector<8xf32>
    %82 = vector.shape_cast %81 : vector<8xf32> to vector<8x1xf32>
    %cst_26 = arith.constant 3.906250e-03 : f32
    %83 = vector.broadcast %cst_26 : f32 to vector<8x1xf32>
    %84 = arith.mulf %79, %83 : vector<8x1xf32>
    %85 = vector.broadcast %84 : vector<8x1xf32> to vector<8x256xf32>
    %86 = arith.subf %77, %85 : vector<8x256xf32>
    %87 = arith.mulf %86, %86 : vector<8x256xf32>
    %88 = arith.mulf %79, %84 : vector<8x1xf32>
    %89 = arith.subf %82, %88 : vector<8x1xf32>
    %cst_27 = arith.constant 0.000000e+00 : f32
    %90 = vector.broadcast %cst_27 : f32 to vector<8x1xf32>
    %91 = arith.maximumf %89, %90 : vector<8x1xf32>
    %cst_28 = arith.constant 0.00392156886 : f32
    %92 = vector.broadcast %cst_28 : f32 to vector<8x1xf32>
    %93 = arith.mulf %91, %92 : vector<8x1xf32>
    %cst_29 = arith.constant 9.99999974E-5 : f32
    %94 = vector.broadcast %cst_29 : f32 to vector<8x1xf32>
    %95 = arith.addf %93, %94 : vector<8x1xf32>
    %cst_30 = arith.constant 4.000000e+00 : f32
    %96 = vector.broadcast %cst_30 : f32 to vector<8x1xf32>
    %97 = arith.mulf %96, %95 : vector<8x1xf32>
    %98 = tpu.reciprocal %97 {approx = true} : vector<8x1xf32> -> vector<8x1xf32>
    %99 = arith.mulf %97, %98 : vector<8x1xf32>
    %cst_31 = arith.constant 2.000000e+00 : f32
    %100 = vector.broadcast %cst_31 : f32 to vector<8x1xf32>
    %101 = arith.subf %100, %99 : vector<8x1xf32>
    %102 = arith.mulf %98, %101 : vector<8x1xf32>
    %103 = vector.broadcast %102 : vector<8x1xf32> to vector<8x256xf32>
    %104 = arith.mulf %87, %103 : vector<8x256xf32>
    %cst_32 = arith.constant 5.000000e-01 : f32
    %105 = vector.broadcast %cst_32 : f32 to vector<8x256xf32>
    %106 = arith.addf %104, %105 : vector<8x256xf32>
    %cst_33 = arith.constant 5.000000e-01 : f32
    %107 = vector.broadcast %cst_33 : f32 to vector<8x256xf32>
    %108 = arith.mulf %107, %106 : vector<8x256xf32>
    %109 = math.tanh %108 : vector<8x256xf32>
    %cst_34 = arith.constant 5.000000e-01 : f32
    %110 = vector.broadcast %cst_34 : f32 to vector<8x256xf32>
    %111 = arith.mulf %110, %109 : vector<8x256xf32>
    %cst_35 = arith.constant 5.000000e-01 : f32
    %112 = vector.broadcast %cst_35 : f32 to vector<8x256xf32>
    %113 = arith.addf %111, %112 : vector<8x256xf32>
    %114 = arith.mulf %77, %113 : vector<8x256xf32>
    %c0_36 = arith.constant 0 : index
    %c0_37 = arith.constant 0 : index
    %115 = vector.load %arg5[%c0_36, %c0_37] : memref<8x256xf32, #tpu.memory_space<vmem>>, vector<8x256xf32>
    tpu.vector_store %arg5[%c0_36, %c0_37], %114 {strides = array<i32>} : memref<8x256xf32, #tpu.memory_space<vmem>>, vector<8x256xf32>,
    return
  }
  func.func @transform_0(%arg0: i32) -> (i32, i32) {
    %c0_i32 = arith.constant 0 : i32
    %c0_i32_0 = arith.constant 0 : i32
    return %arg0, %c0_i32 : i32, i32
  }
  func.func @transform_1(%arg0: i32) -> (i32, i32) {
    %c0_i32 = arith.constant 0 : i32
    %c0_i32_0 = arith.constant 0 : i32
    %c0_i32_1 = arith.constant 0 : i32
    return %c0_i32, %c0_i32_0 : i32, i32
  }
  func.func @transform_2(%arg0: i32) -> (i32, i32) {
    %c0_i32 = arith.constant 0 : i32
    %c0_i32_0 = arith.constant 0 : i32
    %c0_i32_1 = arith.constant 0 : i32
    return %c0_i32, %c0_i32_0 : i32, i32
  }
  func.func @transform_3(%arg0: i32) -> (i32, i32) {
    %c0_i32 = arith.constant 0 : i32
    %c0_i32_0 = arith.constant 0 : i32
    %c0_i32_1 = arith.constant 0 : i32
    return %c0_i32, %c0_i32_0 : i32, i32
  }
  func.func @transform_4(%arg0: i32) -> (i32, i32) {
    %c0_i32 = arith.constant 0 : i32
    %c0_i32_0 = arith.constant 0 : i32
    return %arg0, %c0_i32 : i32, i32
  }
}

</mosaic_0001>

<bundles_post_ra>
// kernel: tpu_custom_call.1
= control target key start
LH: loop header
LB: loop body
LE: loop exit
PB: predicated region body
PF: predicated region fallthrough
CT: control target
= control target key end

     0   :  { %9 = vsyncpa [#allocation3], 0  ;;  %s491_s0 = inlined_call_operand.hbm [shape: f32[8,256], index: 0, kind: input, shape index: {}]   ;;  %s492_s1 = inlined_call_operand.vmem [shape: bf16[8,8], index: 1, kind: input, shape index: {}]   ;;  %s493_s2 = inlined_call_operand.vmem [shape: f32[8,1], index: 2, kind: input, shape index: {}]   ;;  %s494_s3 = inlined_call_operand.vmem [shape: f32[4,256], index: 3, kind: input, shape index: {}]   ;;  %s495_s4 = inlined_call_operand.hbm [shape: f32[8,256], index: 4, kind: output, shape index: {}]  }
   0x1   :  { %10 = vsyncpa [#allocation4], 0  ;;  %s396_s15 = smov [#allocation2]   ;;  %s348_s19 = scalar_lea.hbm %s491_s0, 256 }
   0x2   :  { %s17_s16 = sshll.u32 %s396_s15, 4  ;;  %p349_p0 = scmp.ne.s32.totalorder %s491_s0, %s348_s19  ;;  %s18_s16 = int_to_ptr.vmem [resolvable:$true] %s17_s16 }
   0x3   :  { %p352_p1 = scmp.lt.u32.totalorder %s348_s19, %s491_s0 }
   0x5   :  { %p354_p2 = pnand %p352_p1, %p349_p0 }
   0x7   :  { %357 = shalt.err (!%p354_p2)
}
   0x8   :  { %s358_s24 = scalar_lea.vmem %s18_s16, 256  ;;  %p363_p4 = scmp.lt.s32.totalorder %s18_s16, %s18_s16 }
   0x9   :  { %p359_p3 = scmp.ne.s32.totalorder %s18_s16, %s358_s24  ;;  %p364_p5 = scmp.lt.s32.totalorder %s358_s24, %s358_s24 }
   0xb   :  { %p365_p6 = por %p364_p5, %p363_p4 }
   0xd   :  { %p366_p7 = pnand %p365_p6, %p359_p3 }
   0xf   :  { %369 = shalt.err (!%p366_p7)
}
  0x10   :  { %20 = dma.hbm_to_vmem [thread:$0]  %s491_s0, 256, %s18_s16, [#allocation3]  }
  0x11   :  { %392 = dma.done.wait [#allocation3], 256  }
  0x12   :  { %393 = vsyncadd [#allocation3], 4294967040  ;;  %v31_v0 = vld [vmem:[#allocation2] sm:$0xff]  ;;  %v32_v1 = vld [vmem:[#allocation2 + $0x8] sm:$0xff]  ;;  %s397_s0 = smov 127   ;;  %s398_s27 = smov 1   ;;  %v75_v37 = vlaneseq }
  0x13   :  { %v34_v2 = vadd.f32 %v32_v1, %v31_v0  ;;  %v37_v3 = vmul.f32 %v31_v0, %v31_v0  ;;  %v38_v4 = vmul.f32 %v32_v1, %v32_v1  ;;  %v451_v40 = vld [vmem:[%s494_s3] sm:$0xff]  ;;  %s399_s3 = smov 16   ;;  %s400_s30 = smov 112   ;;  %vm207_vm4 = vcmask 1043456  }
  0x14   :  { %v89_v38 = vshrl.u32 %v75_v37, 7  ;;  %v453_v41 = vand.u32 127, %v75_v37  ;;  %vm203_vm5 = vcmask 64512  }
  0x15   :  { %35 = vadd.xlane.f32.xlu0 %v34_v2  ;;  %v39_v5 = vadd.f32 %v38_v4, %v37_v3 }
  0x16   :  { %v90_v39 = vsub.s32 0, %v89_v38  ;;  %v94_v43 = vsub.s32 4, %v89_v38  ;;  %v112_v44 = vsub.s32 1, %v89_v38  ;;  %v116_v46 = vsub.s32 5, %v89_v38 }
  0x17   :  { %vm77_vm0 = vcmp.lt.s32.totalorder %v453_v41, 1  ;;  %vm84_vm1 = vcmp.lt.s32.totalorder %v453_v41, 127  ;;  %vm136_vm2 = vcmp.lt.s32.totalorder %v453_v41, 16  ;;  %vm143_vm3 = vcmp.lt.s32.totalorder %v453_v41, 112 }
  0x18   :  { %v91_v42 = vrot.slane %v451_v40, %v90_v39  ;;  %v95_v47 = vrot.slane %v451_v40, %v94_v43  ;;  %v113_v49 = vrot.slane %v451_v40, %v112_v44  ;;  %v117_v51 = vrot.slane %v451_v40, %v116_v46 }
  0x19   :  { %40 = vadd.xlane.f32.xlu0 %v39_v5  ;;  %v401_v5 = vmov 0  }
  0x1a   :  { %v101_v48 = vrot.slane %v91_v42, %v90_v39  ;;  %v105_v53 = vrot.slane %v95_v47, %v90_v39  ;;  %v123_v55 = vrot.slane %v113_v49, %v112_v44  ;;  %v127_v58 = vrot.slane %v117_v51, %v112_v44  ;;  %246 = vmatprep.mubr.bf16.mxu0 %v401_v5  ;;  %v194_v44 = vld [vmem:[%s492_s1] sm:$0xf]  ;;  %s402_s1 = smov [#allocation5]  }
  0x1b   :  { %330 = vset.pattern.permute.xlu1 %v401_v5  ;;  %331 = vset.pattern.permute.xlu0 %v401_v5  ;;  %s312_s8 = sshll.u32 %s402_s1, 4  ;;  %s313_s8 = int_to_ptr.vmem [resolvable:$true] %s312_s8 }
  0x1c   :  { %s370_s9 = scalar_lea.vmem %s313_s8, 256  ;;  %p375_p9 = scmp.lt.s32.totalorder %s313_s8, %s313_s8 }
  0x1d   :  { %p371_p8 = scmp.ne.s32.totalorder %s313_s8, %s370_s9  ;;  %p376_p10 = scmp.lt.s32.totalorder %s370_s9, %s370_s9 }
  0x1f   :  { %p377_p11 = por %p376_p10, %p375_p9 }
  0x21   :  { %p378_p12 = pnand %p377_p11, %p371_p8 }
  0xa2   :  { %v36_v6 = vpop.xlane.xlu0 %35 }
  0xa3   :  { %v42_v7 = vmul.f32 0.00390625, %v36_v6 }
  0xa5   :  { %v47_v8 = vmul.f32 %v42_v7, %v36_v6  ;;  %v43_v16 = vsub.f32 %v31_v0, %v42_v7  ;;  %v44_v17 = vsub.f32 %v32_v1, %v42_v7  ;;  %v195_v6 = vld [vmem:[%s493_s2] sm:$0xff]  ;;  %v148_v7 = vsub.s32 2, %v89_v38 }
  0xa6   :  { %v41_v9 = vpop.xlane.xlu0 %40 }
  0xa7   :  { %v48_v10 = vsub.f32 %v41_v9, %v47_v8  ;;  %v45_v20 = vmul.f32 %v43_v16, %v43_v16  ;;  %v46_v21 = vmul.f32 %v44_v17, %v44_v17  ;;  %v152_v8 = vsub.s32 6, %v89_v38 }
  0xa9   :  { %v49_v11 = vmax.f32 %v48_v10, 0.0  ;;  %v149_v10 = vrot.slane %v451_v40, %v148_v7 }
  0xab   :  { %v50_v12 = vmul.f32 0.003921569, %v49_v11  ;;  %v153_v11 = vrot.slane %v451_v40, %v152_v8 }
  0xad   :  { %v51_v13 = vadd.f32 0.0001, %v50_v12  ;;  %v170_v12 = vsub.s32 3, %v89_v38  ;;  %v163_v16 = vrot.slane %v153_v11, %v148_v7 }
  0xaf   :  { %v52_v14 = vmul.f32 4.0, %v51_v13  ;;  %v174_v13 = vsub.s32 7, %v89_v38  ;;  %v171_v17 = vrot.slane %v451_v40, %v170_v12 }
  0xb1   :  { %332 = vrcp.f32 %v52_v14 }
  0xbb   :  { %v333_v15 = vpop.eup %332 }
  0xbc   :  { %v54_v18 = vmul.f32 %v333_v15, %v52_v14 }
  0xbe   :  { %v55_v19 = vsub.f32 2.0, %v54_v18  ;;  %v175_v18 = vrot.slane %v451_v40, %v174_v13 }
  0xc0   :  { %v56_v22 = vmul.f32 %v333_v15, %v55_v19  ;;  %v159_v15 = vrot.slane %v149_v10, %v148_v7 }
  0xc2   :  { %v57_v23 = vmul.f32 %v56_v22, %v45_v20  ;;  %v58_v24 = vmul.f32 %v56_v22, %v46_v21 }
  0xc4   :  { %v59_v25 = vadd.f32 0.5, %v57_v23  ;;  %v60_v26 = vadd.f32 0.5, %v58_v24  ;;  %v181_v24 = vrot.slane %v171_v17, %v170_v12 }
  0xc6   :  { %v61_v27 = vmul.f32 0.5, %v59_v25  ;;  %v62_v28 = vmul.f32 0.5, %v60_v26  ;;  %v185_v25 = vrot.slane %v175_v18, %v170_v12 }
  0xc8   :  { %334 = vtanh.f32 %v61_v27 }
  0xc9   :  { %336 = vtanh.f32 %v62_v28 }
  0xd2   :  { %v335_v29 = vpop.eup %334 }
  0xd3   :  { %v337_v30 = vpop.eup %336  ;;  %v65_v31 = vmul.f32 0.5, %v335_v29 }
  0xd4   :  { %v66_v32 = vmul.f32 0.5, %v337_v30 }
  0xd5   :  { %v67_v33 = vadd.f32 0.5, %v65_v31 }
  0xd6   :  { %v68_v34 = vadd.f32 0.5, %v66_v32 }
  0xd7   :  { %v440_v35 = vmul.f32 %v67_v33, %v31_v0 }
  0xd8   :  { %v444_v36 = vmul.f32 %v68_v34, %v32_v1 }
  0xd9   :  { %80 = vrot.lane.b32.xlu0 %v440_v35, %s397_s0  ;;  %71 = vrot.lane.b32.xlu1 %v440_v35, %s398_s27 }
  0xdd   :  { %73 = vrot.lane.b32.xlu1 %v444_v36, %s398_s27 }
  0xe1   :  { %82 = vrot.lane.b32.xlu1 %v444_v36, %s397_s0 }
 0x14b   :  { %v72_v45 = vpop.permute.xlu1 %71  ;;  %v81_v57 = vpop.permute.xlu0 %80 }
 0x14f   :  { %v74_v50 = vpop.permute.xlu1 %73 }
 0x150   :  { %v79_v52 = vsel %vm77_vm0, %v74_v50, %v72_v45  ;;  %v78_v56 = vsel %vm77_vm0, %v72_v45, %v74_v50 }
 0x151   :  { %v106_v54 = vmul.f32 %v101_v48, %v79_v52  ;;  %v107_v62 = vmul.f32 %v105_v53, %v78_v56 }
 0x153   :  { %v83_v59 = vpop.permute.xlu1 %82  ;;  %v108_v63 = vadd.f32 %v106_v54, %v440_v35  ;;  %v109_v3 = vadd.f32 %v107_v62, %v444_v36 }
 0x154   :  { %v85_v60 = vsel %vm84_vm1, %v81_v57, %v83_v59  ;;  %v86_v61 = vsel %vm84_vm1, %v83_v59, %v81_v57 }
 0x155   :  { %v128_v0 = vmul.f32 %v123_v55, %v85_v60  ;;  %v129_v1 = vmul.f32 %v127_v58, %v86_v61 }
 0x157   :  { %v130_v2 = vadd.f32 %v128_v0, %v108_v63  ;;  %v131_v4 = vadd.f32 %v129_v1, %v109_v3 }
 0x159   :  { %132 = vrot.lane.b32.xlu1 %v130_v2, %s399_s3 }
 0x15d   :  { %134 = vrot.lane.b32.xlu1 %v131_v4, %s399_s3 }
 0x161   :  { %139 = vrot.lane.b32.xlu1 %v130_v2, %s400_s30 }
 0x165   :  { %141 = vrot.lane.b32.xlu1 %v131_v4, %s400_s30 }
 0x169   :  { %200 = vperm.xlu1 %330, %v195_v6  }
 0x1cb   :  { %v133_v9 = vpop.permute.xlu1 %132 }
 0x1cf   :  { %v135_v14 = vpop.permute.xlu1 %134 }
 0x1d0   :  { %v137_v19 = vsel %vm136_vm2, %v133_v9, %v135_v14  ;;  %v138_v20 = vsel %vm136_vm2, %v135_v14, %v133_v9 }
 0x1d1   :  { %v164_v22 = vmul.f32 %v159_v15, %v138_v20  ;;  %v165_v23 = vmul.f32 %v163_v16, %v137_v19 }
 0x1d3   :  { %v140_v21 = vpop.permute.xlu1 %139  ;;  %v166_v29 = vadd.f32 %v164_v22, %v130_v2  ;;  %v167_v30 = vadd.f32 %v165_v23, %v131_v4 }
 0x1d7   :  { %v142_v26 = vpop.permute.xlu1 %141 }
 0x1d8   :  { %v144_v27 = vsel %vm143_vm3, %v140_v21, %v142_v26  ;;  %v145_v28 = vsel %vm143_vm3, %v142_v26, %v140_v21 }
 0x1d9   :  { %v186_v31 = vmul.f32 %v181_v24, %v144_v27  ;;  %v187_v32 = vmul.f32 %v185_v25, %v145_v28 }
 0x1db   :  { %v188_v33 = vadd.f32 %v186_v31, %v166_v29  ;;  %v189_v34 = vadd.f32 %v187_v32, %v167_v30 }
 0x1dd   :  { %v191_v37 = vmul.f32 0.11111111, %v189_v34  ;;  %v190_v38 = vmul.f32 0.11111111, %v188_v33 }
 0x1df   :  { %v193_v39 = vsub.f32 %v444_v36, %v191_v37  ;;  %v192_v40 = vsub.f32 %v440_v35, %v190_v38 }
 0x1e1   :  { %v197_v41 = vpack.c.bf16 %v193_v39, %v193_v39  ;;  %v196_v42 = vpack.c.bf16 %v192_v40, %v192_v40 }
 0x1e3   :  { %321 = vmatprep.subr.msk.bf16.mxu0 %vm207_vm4, %v197_v41  ;;  %v209_v43 = vsel %vm207_vm4, %v196_v42, 0 }
 0x1e4   :  { %215 = vmatpush1.bf16.msra.mxu0 %v209_v43 }
 0x1e7   :  { %322 = vmatmul.mubr.msk.bf16.vlgmr.msra.gmra.mrb[0].mxu0 %vm203_vm5, %v194_v44 }
 0x1e8   :  { %v201_v45 = vpop.permute.xlu1 %200 }
 0x2ba   :  { %v248_v46 = vpop.f32.mrb[0].mxu0 }
 0x2bb   :  { %v249_v47 = vadd.f32 %v248_v46, %v201_v45  ;;  %v250_v48 = vpop.f32.mrb[1].mxu0 }
 0x2bc   :  { %v251_v49 = vadd.f32 %v250_v48, %v201_v45  ;;  %v252_v50 = vpop.f32.mrb[2].mxu0 }
 0x2bd   :  { %v255_v51 = vmul.f32 0.5, %v249_v47  ;;  %v253_v52 = vpop.f32.mrb[3].mxu0 }
 0x2be   :  { %v256_v53 = vmul.f32 0.5, %v251_v49 }
 0x2bf   :  { %338 = vtanh.f32 %v255_v51 }
 0x2c0   :  { %340 = vtanh.f32 %v256_v53 }
 0x2c9   :  { %v339_v54 = vpop.eup %338 }
 0x2ca   :  { %v341_v55 = vpop.eup %340  ;;  %v259_v56 = vmul.f32 0.5, %v339_v54 }
 0x2cb   :  { %v260_v57 = vmul.f32 0.5, %v341_v55 }
 0x2cc   :  { %v261_v58 = vadd.f32 0.5, %v259_v56 }
 0x2cd   :  { %v262_v59 = vadd.f32 0.5, %v260_v57 }
 0x2ce   :  { %v263_v60 = vadd.f32 1.0, %v261_v58 }
 0x2cf   :  { %v264_v61 = vadd.f32 1.0, %v262_v59 }
 0x2d0   :  { %v265_v62 = vmul.f32 %v263_v60, %v440_v35 }
 0x2d1   :  { %v266_v63 = vmul.f32 %v264_v61, %v444_v36 }
 0x2d2   :  { %v270_v0 = vmul.f32 %v265_v62, %v265_v62 }
 0x2d3   :  { %v267_v1 = vadd.f32 %v266_v63, %v265_v62  ;;  %v271_v2 = vmul.f32 %v266_v63, %v266_v63 }
 0x2d5   :  { %268 = vadd.xlane.f32.xlu0 %v267_v1  ;;  %v272_v3 = vadd.f32 %v271_v2, %v270_v0 }
 0x2d7   :  { %273 = vadd.xlane.f32.xlu1 %v272_v3 }
 0x362   :  { %v269_v4 = vpop.xlane.xlu0 %268 }
 0x363   :  { %v275_v5 = vmul.f32 0.00390625, %v269_v4 }
 0x364   :  { %v274_v7 = vpop.xlane.xlu1 %273 }
 0x365   :  { %v280_v6 = vmul.f32 %v275_v5, %v269_v4  ;;  %v276_v35 = vsub.f32 %v265_v62, %v275_v5  ;;  %v277_v14 = vsub.f32 %v266_v63, %v275_v5 }
 0x367   :  { %v281_v8 = vsub.f32 %v274_v7, %v280_v6  ;;  %v278_v16 = vmul.f32 %v276_v35, %v276_v35  ;;  %v279_v17 = vmul.f32 %v277_v14, %v277_v14 }
 0x369   :  { %v282_v9 = vmax.f32 %v281_v8, 0.0 }
 0x36b   :  { %v283_v10 = vmul.f32 0.003921569, %v282_v9 }
 0x36d   :  { %v284_v11 = vadd.f32 0.0001, %v283_v10 }
 0x36f   :  { %v285_v12 = vmul.f32 4.0, %v284_v11 }
 0x371   :  { %342 = vrcp.f32 %v285_v12 }
 0x37b   :  { %v343_v13 = vpop.eup %342 }
 0x37c   :  { %v287_v36 = vmul.f32 %v343_v13, %v285_v12 }
 0x37e   :  { %v288_v15 = vsub.f32 2.0, %v287_v36 }
 0x380   :  { %v289_v18 = vmul.f32 %v343_v13, %v288_v15 }
 0x382   :  { %v290_v19 = vmul.f32 %v289_v18, %v278_v16  ;;  %v291_v20 = vmul.f32 %v289_v18, %v279_v17 }
 0x384   :  { %v292_v21 = vadd.f32 0.5, %v290_v19  ;;  %v293_v22 = vadd.f32 0.5, %v291_v20 }
 0x386   :  { %v294_v23 = vmul.f32 0.5, %v292_v21  ;;  %v295_v24 = vmul.f32 0.5, %v293_v22 }
 0x388   :  { %344 = vtanh.f32 %v294_v23 }
 0x389   :  { %346 = vtanh.f32 %v295_v24 }
 0x392   :  { %v345_v25 = vpop.eup %344 }
 0x393   :  { %v347_v26 = vpop.eup %346  ;;  %v298_v27 = vmul.f32 0.5, %v345_v25 }
 0x394   :  { %v299_v28 = vmul.f32 0.5, %v347_v26 }
 0x395   :  { %v300_v29 = vadd.f32 0.5, %v298_v27 }
 0x396   :  { %v301_v30 = vadd.f32 0.5, %v299_v28 }
 0x397   :  { %v302_v31 = vmul.f32 %v300_v29, %v265_v62 }
 0x398   :  { %v303_v32 = vmul.f32 %v301_v30, %v266_v63 }
 0x399   :  { %304 = vst [vmem:[#allocation5] sm:$0xff] %v302_v31 }
 0x39a   :  { %305 = vst [vmem:[#allocation5 + $0x8] sm:$0xff] %v303_v32 }
 0x39b   :  { %381 = shalt.err (!%p378_p12)
}
 0x39c   :  { %s382_s12 = scalar_lea.hbm %s495_s4, 256 }
 0x39d   :  { %p383_p13 = scmp.ne.s32.totalorder %s495_s4, %s382_s12  ;;  %p386_p0 = scmp.lt.u32.totalorder %s382_s12, %s495_s4 }
 0x39f   :  { %p388_p1 = pnand %p386_p0, %p383_p13 }
 0x3a1   :  { %391 = shalt.err (!%p388_p1)
}
 0x3a2   :  { %315 = dma.vmem_to_hbm [thread:$0]  %s313_s8, 256, %s495_s4, [#allocation4]  }
 0x3a3   :  { %394 = dma.done.wait [#allocation4], 256  }
 0x3a4   :  { %395 = vsyncadd [#allocation4], 4294967040 }
 0x3a5   :  { %319 = vsyncpa [#allocation3], 1 }
 0x3a6   :  { %320 = vsyncpa [#allocation4], 1 }

</bundles_post_ra>
